<compile_context>
chip_gen: v5e
topology: v5e:2x2
jax: 0.10.0
libtpu: 0.0.40
codegen_flags: <defaults>
</compile_context>

<pallas_src>
import math

import jax
import jax.numpy as jnp
from jax import lax
from jax.experimental import pallas as pl
from jax.experimental.pallas import tpu as pltpu


def dilated_conv_norm_forward(x, w, b, gamma, beta, *, stride=1, dilation=1,
                              groups=1, eps=1e-8):
    """Fused Conv1d(+bias) + GlobLN forward.

    x:     (B, C_in, T)      float32
    w:     (C_out, C_in, K)  conv weight (PyTorch layout)
    b:     (C_out,)          conv bias
    gamma: (C_out,)          GlobLN gain
    beta:  (C_out,)          GlobLN bias
    returns (B, C_out, T_out)
    """
    # TODO(synk): stride > 1 (down-sampling) and groups > 1 (grouped conv)
    # variants are not implemented; the module defaults (stride=1, groups=1)
    # are what TDANet's DilatedConvNorm uses here.
    assert stride == 1, "Pallas kernel currently supports stride == 1 only"
    assert groups == 1, "Pallas kernel currently supports groups == 1 only"

    B, C_in, T = x.shape
    C_out, C_in_w, K = w.shape
    assert C_in_w == C_in
    assert C_out % 8 == 0, "C_out should be a multiple of 8 for clean tiling"

    pad = (K - 1) // 2 * dilation
    T_out = T + 2 * pad - dilation * (K - 1)          # conv output length (stride 1)

    # Pack 2 batch elements per grid step when possible: 256-lane RHS fills
    # the v6e/v7x MXU columns and halves per-step overhead.
    NB = 2 if (B % 2 == 0) else 1
    grid = (B // NB,)

    # Tap-major flattened weight: w_flat[o, k*C_in + i] = w[o, i, k].  bf16 for
    # native MXU issue rate; the accumulator stays f32.
    w_flat = jnp.transpose(w, (0, 2, 1)).reshape(C_out, K * C_in).astype(jnp.bfloat16)
    # bias / gamma / beta packed as columns of one resident (C_out, 3) block.
    params = jnp.stack([b, gamma, beta], axis=1).astype(jnp.float32)

    inv_n = 1.0 / float(C_out * T_out)

    def kernel(x_ref, w_ref, p_ref, o_ref):
        # x_ref : (NB, C_in, T)     unpadded input, NB batch elements
        # w_ref : (C_out, K*C_in)   fused conv weight (bf16, VMEM-resident)
        # p_ref : (C_out, 3)        packed [bias | gamma | beta]
        # o_ref : (NB, C_out, T_out)
        xb = x_ref[...]                                           # f32
        if pad > 0:
            z = jnp.zeros((NB, C_in, pad), xb.dtype)
            xp = jnp.concatenate([z, xb, z], axis=-1)             # (NB, C_in, T+2*pad)
        else:
            xp = xb

        # Fused RHS: K dilated taps stacked along the contraction dim,
        # NB batch elements concatenated along the lane (time) dim.
        cols = []
        for bb in range(NB):
            taps = [xp[bb, :, k * dilation:k * dilation + T_out] for k in range(K)]
            cols.append(jnp.concatenate(taps, axis=0))            # (K*C_in, T_out)
        rhs = cols[0] if NB == 1 else jnp.concatenate(cols, axis=1)
        rhs = rhs.astype(jnp.bfloat16)                            # (K*C_in, NB*T_out)

        # Single MXU matmul: (C_out, K*C_in) x (K*C_in, NB*T_out), f32 acc.
        acc = jnp.dot(w_ref[...], rhs, preferred_element_type=jnp.float32)

        bias = p_ref[:, 0:1]                                      # (C_out, 1)
        gammac = p_ref[:, 1:2]
        betac = p_ref[:, 2:3]

        # GlobLN per batch element; each 128-lane half is a vreg-aligned slice.
        for bb in range(NB):
            y = acc[:, bb * T_out:(bb + 1) * T_out] + bias        # (C_out, T_out)
            s1 = jnp.sum(y, keepdims=True) * inv_n                # mean, (1, 1)
            s2 = jnp.sum(y * y, keepdims=True) * inv_n            # E[y^2], (1, 1)
            var = jnp.maximum(s2 - s1 * s1, 0.0)                  # guard cancellation
            scale = gammac * lax.rsqrt(var + eps)                 # (C_out, 1)
            shift = betac - s1 * scale                            # (C_out, 1)
            o_ref[bb, :, :] = (y * scale + shift).astype(o_ref.dtype)

    flops = 2 * B * C_out * K * C_in * T_out + 6 * B * C_out * T_out
    bytes_accessed = (4 * x.size + 2 * w_flat.size + 4 * params.size
                      + 4 * B * C_out * T_out)

    return pl.pallas_call(
        kernel,
        out_shape=jax.ShapeDtypeStruct((B, C_out, T_out), x.dtype),
        grid_spec=pl.GridSpec(
            grid=grid,
            in_specs=[
                pl.BlockSpec((NB, C_in, T), lambda i: (i, 0, 0)),        # x: NB batches/step
                pl.BlockSpec((C_out, K * C_in), lambda i: (0, 0)),       # weight: resident
                pl.BlockSpec((C_out, 3), lambda i: (0, 0)),              # bias/gamma/beta
            ],
            out_specs=pl.BlockSpec((NB, C_out, T_out), lambda i: (i, 0, 0)),
        ),
        compiler_params=pltpu.CompilerParams(
            dimension_semantics=("parallel",),
            # At demo shapes VMEM use is tiny; set vmem_limit_bytes explicitly
            # when scaling T / C_out to real TDANet sizes (v7x has 64 MiB).
        ),
        cost_estimate=pl.CostEstimate(
            flops=flops, transcendentals=B, bytes_accessed=bytes_accessed),
    )(x, w_flat, params)


if __name__ == "__main__":
    # Module config: DilatedConvNorm(nIn=16, nOut=32, kSize=5, stride=1, d=2)
    B, C_in, C_out, T = 2, 16, 32, 128
    K, dilation, stride, groups = 5, 2, 1, 1

    key = jax.random.PRNGKey(0)
    kx, kw, kb, kg, kbe = jax.random.split(key, 5)

    x = jax.random.normal(kx, (B, C_in, T), dtype=jnp.float32)
    bound = 1.0 / math.sqrt(C_in * K)                    # PyTorch Conv1d init range
    w = jax.random.uniform(kw, (C_out, C_in, K), jnp.float32, -bound, bound)
    b = jax.random.uniform(kb, (C_out,), jnp.float32, -bound, bound)
    # Perturb gamma/beta away from the (1, 0) init so the affine path is tested.
    gamma = 1.0 + 0.1 * jax.random.normal(kg, (C_out,), dtype=jnp.float32)
    beta = 0.1 * jax.random.normal(kbe, (C_out,), dtype=jnp.float32)

    out = dilated_conv_norm_forward(
        x, w, b, gamma, beta, stride=stride, dilation=dilation, groups=groups)
    out = jax.block_until_ready(out)

    # Pure-JAX reference (same math as the PyTorch forward).
    pad = (K - 1) // 2 * dilation
    conv = lax.conv_general_dilated(
        x, w, window_strides=(stride,), padding=[(pad, pad)],
        rhs_dilation=(dilation,), dimension_numbers=("NCH", "OIH", "NCH"),
        feature_group_count=groups,
    ) + b[None, :, None]
    mean = conv.mean(axis=(1, 2), keepdims=True)
    var = ((conv - mean) ** 2).mean(axis=(1, 2), keepdims=True)
    ref = gamma[None, :, None] * ((conv - mean) / jnp.sqrt(var + 1e-8)) \
        + beta[None, :, None]

    assert out.shape == ref.shape == (B, C_out, T)
    max_err = float(jnp.max(jnp.abs(out - ref)))
    assert jnp.allclose(out, ref, atol=2e-2, rtol=2e-2), f"mismatch: {max_err}"

    print("KERNEL_OK")
</pallas_src>

<mosaic_0001>
module attributes {stable_mosaic.version = 11 : i64} {
  func.func @kernel(%arg0: i32, %arg1: memref<2x16x128xf32, #tpu.memory_space<vmem>>, %arg2: memref<32x80xbf16, #tpu.memory_space<vmem>>, %arg3: memref<32x3xf32, #tpu.memory_space<vmem>>, %arg4: memref<2x32x128xf32, #tpu.memory_space<vmem>>) attributes {dimension_semantics = [#tpu.dimension_semantics<parallel>], iteration_bounds = array<i64: 1>, scalar_prefetch = 0 : i64, scratch_operands = 0 : i64, tpu.core_type = #tpu.core_type<tc>, window_params = [{transform_indices = @transform_0, window_bounds = array<i64: 2, 16, 128>}, {pipeline_mode = #tpu.pipeline_mode<synchronous>, transform_indices = @transform_1, window_bounds = array<i64: 32, 80>}, {pipeline_mode = #tpu.pipeline_mode<synchronous>, transform_indices = @transform_2, window_bounds = array<i64: 32, 3>}, {transform_indices = @transform_3, window_bounds = array<i64: 2, 32, 128>}]} {
    %c0 = arith.constant 0 : index
    %c0_0 = arith.constant 0 : index
    %c0_1 = arith.constant 0 : index
    %0 = vector.load %arg1[%c0, %c0_0, %c0_1] : memref<2x16x128xf32, #tpu.memory_space<vmem>>, vector<2x16x128xf32>
    %cst = arith.constant 0.000000e+00 : f32
    %1 = vector.broadcast %cst : f32 to vector<2x16x4xf32>
    %2 = tpu.concatenate %1, %0, %1 in 2 : vector<2x16x4xf32>, vector<2x16x128xf32>, vector<2x16x4xf32> -> vector<2x16x136xf32>
    %3 = vector.extract_strided_slice %2 {offsets = [0, 0, 0], sizes = [1, 16, 128], strides = [1, 1, 1]} : vector<2x16x136xf32> to vector<1x16x128xf32>
    %4 = vector.shape_cast %3 : vector<1x16x128xf32> to vector<16x128xf32>
    %5 = vector.extract_strided_slice %2 {offsets = [0, 0, 2], sizes = [1, 16, 128], strides = [1, 1, 1]} : vector<2x16x136xf32> to vector<1x16x128xf32>
    %6 = vector.shape_cast %5 : vector<1x16x128xf32> to vector<16x128xf32>
    %7 = vector.extract_strided_slice %2 {offsets = [0, 0, 4], sizes = [1, 16, 128], strides = [1, 1, 1]} : vector<2x16x136xf32> to vector<1x16x128xf32>
    %8 = vector.shape_cast %7 : vector<1x16x128xf32> to vector<16x128xf32>
    %9 = vector.extract_strided_slice %2 {offsets = [0, 0, 6], sizes = [1, 16, 128], strides = [1, 1, 1]} : vector<2x16x136xf32> to vector<1x16x128xf32>
    %10 = vector.shape_cast %9 : vector<1x16x128xf32> to vector<16x128xf32>
    %11 = vector.extract_strided_slice %2 {offsets = [0, 0, 8], sizes = [1, 16, 128], strides = [1, 1, 1]} : vector<2x16x136xf32> to vector<1x16x128xf32>
    %12 = vector.shape_cast %11 : vector<1x16x128xf32> to vector<16x128xf32>
    %13 = tpu.concatenate %4, %6, %8, %10, %12 in 0 : vector<16x128xf32>, vector<16x128xf32>, vector<16x128xf32>, vector<16x128xf32>, vector<16x128xf32> -> vector<80x128xf32>
    %14 = vector.extract_strided_slice %2 {offsets = [1, 0, 0], sizes = [1, 16, 128], strides = [1, 1, 1]} : vector<2x16x136xf32> to vector<1x16x128xf32>
    %15 = vector.shape_cast %14 : vector<1x16x128xf32> to vector<16x128xf32>
    %16 = vector.extract_strided_slice %2 {offsets = [1, 0, 2], sizes = [1, 16, 128], strides = [1, 1, 1]} : vector<2x16x136xf32> to vector<1x16x128xf32>
    %17 = vector.shape_cast %16 : vector<1x16x128xf32> to vector<16x128xf32>
    %18 = vector.extract_strided_slice %2 {offsets = [1, 0, 4], sizes = [1, 16, 128], strides = [1, 1, 1]} : vector<2x16x136xf32> to vector<1x16x128xf32>
    %19 = vector.shape_cast %18 : vector<1x16x128xf32> to vector<16x128xf32>
    %20 = vector.extract_strided_slice %2 {offsets = [1, 0, 6], sizes = [1, 16, 128], strides = [1, 1, 1]} : vector<2x16x136xf32> to vector<1x16x128xf32>
    %21 = vector.shape_cast %20 : vector<1x16x128xf32> to vector<16x128xf32>
    %22 = vector.extract_strided_slice %2 {offsets = [1, 0, 8], sizes = [1, 16, 128], strides = [1, 1, 1]} : vector<2x16x136xf32> to vector<1x16x128xf32>
    %23 = vector.shape_cast %22 : vector<1x16x128xf32> to vector<16x128xf32>
    %24 = tpu.concatenate %15, %17, %19, %21, %23 in 0 : vector<16x128xf32>, vector<16x128xf32>, vector<16x128xf32>, vector<16x128xf32>, vector<16x128xf32> -> vector<80x128xf32>
    %25 = tpu.concatenate %13, %24 in 1 : vector<80x128xf32>, vector<80x128xf32> -> vector<80x256xf32>
    %26 = arith.truncf %25 : vector<80x256xf32> to vector<80x256xbf16>
    %c0_2 = arith.constant 0 : index
    %c0_3 = arith.constant 0 : index
    %27 = vector.load %arg2[%c0_2, %c0_3] : memref<32x80xbf16, #tpu.memory_space<vmem>>, vector<32x80xbf16>
    %cst_4 = arith.constant dense<0.000000e+00> : vector<32x256xf32>
    %28 = tpu.matmul %27, %26, %cst_4 {dimension_numbers = #tpu.dot_dimension_numbers<[1], [0], [0], [1], [0, 0, 1, 1], [], []>} : vector<32x80xbf16>, vector<80x256xbf16>, vector<32x256xf32> -> vector<32x256xf32>
    %c0_5 = arith.constant 0 : index
    %c0_6 = arith.constant 0 : index
    %29 = vector.load %arg3[%c0_5, %c0_6] : memref<32x3xf32, #tpu.memory_space<vmem>>, vector<32x1xf32>
    %c0_7 = arith.constant 0 : index
    %c1 = arith.constant 1 : index
    %30 = vector.load %arg3[%c0_7, %c1] : memref<32x3xf32, #tpu.memory_space<vmem>>, vector<32x1xf32>
    %c0_8 = arith.constant 0 : index
    %c2 = arith.constant 2 : index
    %31 = vector.load %arg3[%c0_8, %c2] : memref<32x3xf32, #tpu.memory_space<vmem>>, vector<32x1xf32>
    %32 = vector.extract_strided_slice %28 {offsets = [0, 0], sizes = [32, 128], strides = [1, 1]} : vector<32x256xf32> to vector<32x128xf32>
    %33 = vector.broadcast %29 : vector<32x1xf32> to vector<32x128xf32>
    %34 = arith.addf %32, %33 : vector<32x128xf32>
    %35 = vector.shape_cast %34 : vector<32x128xf32> to vector<1x32x128xf32>
    %cst_9 = arith.constant dense<0.000000e+00> : vector<1xf32>
    %36 = vector.multi_reduction <add>, %35, %cst_9 [1, 2] : vector<1x32x128xf32> to vector<1xf32>
    %37 = vector.shape_cast %36 : vector<1xf32> to vector<1x1x1xf32>
    %38 = vector.extract %37[0, 0, 0] : f32 from vector<1x1x1xf32>
    %39 = vector.broadcast %38 : f32 to vector<1x1xf32>
    %cst_10 = arith.constant 2.44140625E-4 : f32
    %40 = vector.broadcast %cst_10 : f32 to vector<1x1xf32>
    %41 = arith.mulf %39, %40 : vector<1x1xf32>
    %42 = arith.mulf %34, %34 : vector<32x128xf32>
    %43 = vector.shape_cast %42 : vector<32x128xf32> to vector<1x32x128xf32>
    %cst_11 = arith.constant dense<0.000000e+00> : vector<1xf32>
    %44 = vector.multi_reduction <add>, %43, %cst_11 [1, 2] : vector<1x32x128xf32> to vector<1xf32>
    %45 = vector.shape_cast %44 : vector<1xf32> to vector<1x1x1xf32>
    %46 = vector.extract %45[0, 0, 0] : f32 from vector<1x1x1xf32>
    %47 = vector.broadcast %46 : f32 to vector<1x1xf32>
    %cst_12 = arith.constant 2.44140625E-4 : f32
    %48 = vector.broadcast %cst_12 : f32 to vector<1x1xf32>
    %49 = arith.mulf %47, %48 : vector<1x1xf32>
    %50 = arith.mulf %41, %41 : vector<1x1xf32>
    %51 = arith.subf %49, %50 : vector<1x1xf32>
    %cst_13 = arith.constant 0.000000e+00 : f32
    %52 = vector.broadcast %cst_13 : f32 to vector<1x1xf32>
    %53 = arith.maximumf %51, %52 : vector<1x1xf32>
    %cst_14 = arith.constant 9.99999993E-9 : f32
    %54 = vector.broadcast %cst_14 : f32 to vector<1x1xf32>
    %55 = arith.addf %53, %54 : vector<1x1xf32>
    %56 = math.rsqrt %55 : vector<1x1xf32>
    %57 = vector.broadcast %56 : vector<1x1xf32> to vector<32x1xf32>
    %58 = arith.mulf %30, %57 : vector<32x1xf32>
    %59 = vector.broadcast %41 : vector<1x1xf32> to vector<32x1xf32>
    %60 = arith.mulf %59, %58 : vector<32x1xf32>
    %61 = arith.subf %31, %60 : vector<32x1xf32>
    %62 = vector.broadcast %58 : vector<32x1xf32> to vector<32x128xf32>
    %63 = arith.mulf %34, %62 : vector<32x128xf32>
    %64 = vector.broadcast %61 : vector<32x1xf32> to vector<32x128xf32>
    %65 = arith.addf %63, %64 : vector<32x128xf32>
    %c0_15 = arith.constant 0 : index
    %c0_16 = arith.constant 0 : index
    %c0_17 = arith.constant 0 : index
    %66 = vector.load %arg4[%c0_15, %c0_16, %c0_17] : memref<2x32x128xf32, #tpu.memory_space<vmem>>, vector<1x32x128xf32>
    %67 = vector.shape_cast %66 : vector<1x32x128xf32> to vector<32x128xf32>
    %68 = vector.shape_cast %65 : vector<32x128xf32> to vector<1x32x128xf32>
    tpu.vector_store %arg4[%c0_15, %c0_16, %c0_17], %68 {strides = array<i32>} : memref<2x32x128xf32, #tpu.memory_space<vmem>>, vector<1x32x128xf32>,
    %69 = vector.extract_strided_slice %28 {offsets = [0, 128], sizes = [32, 128], strides = [1, 1]} : vector<32x256xf32> to vector<32x128xf32>
    %70 = vector.broadcast %29 : vector<32x1xf32> to vector<32x128xf32>
    %71 = arith.addf %69, %70 : vector<32x128xf32>
    %72 = vector.shape_cast %71 : vector<32x128xf32> to vector<1x32x128xf32>
    %cst_18 = arith.constant dense<0.000000e+00> : vector<1xf32>
    %73 = vector.multi_reduction <add>, %72, %cst_18 [1, 2] : vector<1x32x128xf32> to vector<1xf32>
    %74 = vector.shape_cast %73 : vector<1xf32> to vector<1x1x1xf32>
    %75 = vector.extract %74[0, 0, 0] : f32 from vector<1x1x1xf32>
    %76 = vector.broadcast %75 : f32 to vector<1x1xf32>
    %cst_19 = arith.constant 2.44140625E-4 : f32
    %77 = vector.broadcast %cst_19 : f32 to vector<1x1xf32>
    %78 = arith.mulf %76, %77 : vector<1x1xf32>
    %79 = arith.mulf %71, %71 : vector<32x128xf32>
    %80 = vector.shape_cast %79 : vector<32x128xf32> to vector<1x32x128xf32>
    %cst_20 = arith.constant dense<0.000000e+00> : vector<1xf32>
    %81 = vector.multi_reduction <add>, %80, %cst_20 [1, 2] : vector<1x32x128xf32> to vector<1xf32>
    %82 = vector.shape_cast %81 : vector<1xf32> to vector<1x1x1xf32>
    %83 = vector.extract %82[0, 0, 0] : f32 from vector<1x1x1xf32>
    %84 = vector.broadcast %83 : f32 to vector<1x1xf32>
    %cst_21 = arith.constant 2.44140625E-4 : f32
    %85 = vector.broadcast %cst_21 : f32 to vector<1x1xf32>
    %86 = arith.mulf %84, %85 : vector<1x1xf32>
    %87 = arith.mulf %78, %78 : vector<1x1xf32>
    %88 = arith.subf %86, %87 : vector<1x1xf32>
    %cst_22 = arith.constant 0.000000e+00 : f32
    %89 = vector.broadcast %cst_22 : f32 to vector<1x1xf32>
    %90 = arith.maximumf %88, %89 : vector<1x1xf32>
    %cst_23 = arith.constant 9.99999993E-9 : f32
    %91 = vector.broadcast %cst_23 : f32 to vector<1x1xf32>
    %92 = arith.addf %90, %91 : vector<1x1xf32>
    %93 = math.rsqrt %92 : vector<1x1xf32>
    %94 = vector.broadcast %93 : vector<1x1xf32> to vector<32x1xf32>
    %95 = arith.mulf %30, %94 : vector<32x1xf32>
    %96 = vector.broadcast %78 : vector<1x1xf32> to vector<32x1xf32>
    %97 = arith.mulf %96, %95 : vector<32x1xf32>
    %98 = arith.subf %31, %97 : vector<32x1xf32>
    %99 = vector.broadcast %95 : vector<32x1xf32> to vector<32x128xf32>
    %100 = arith.mulf %71, %99 : vector<32x128xf32>
    %101 = vector.broadcast %98 : vector<32x1xf32> to vector<32x128xf32>
    %102 = arith.addf %100, %101 : vector<32x128xf32>
    %c1_24 = arith.constant 1 : index
    %c0_25 = arith.constant 0 : index
    %c0_26 = arith.constant 0 : index
    %103 = vector.load %arg4[%c1_24, %c0_25, %c0_26] : memref<2x32x128xf32, #tpu.memory_space<vmem>>, vector<1x32x128xf32>
    %104 = vector.shape_cast %103 : vector<1x32x128xf32> to vector<32x128xf32>
    %105 = vector.shape_cast %102 : vector<32x128xf32> to vector<1x32x128xf32>
    tpu.vector_store %arg4[%c1_24, %c0_25, %c0_26], %105 {strides = array<i32>} : memref<2x32x128xf32, #tpu.memory_space<vmem>>, vector<1x32x128xf32>,
    return
  }
  func.func @transform_0(%arg0: i32) -> (i32, i32, i32) {
    %c0_i32 = arith.constant 0 : i32
    %c0_i32_0 = arith.constant 0 : i32
    %c0_i32_1 = arith.constant 0 : i32
    return %arg0, %c0_i32, %c0_i32_0 : i32, i32, i32
  }
  func.func @transform_1(%arg0: i32) -> (i32, i32) {
    %c0_i32 = arith.constant 0 : i32
    %c0_i32_0 = arith.constant 0 : i32
    %c0_i32_1 = arith.constant 0 : i32
    return %c0_i32, %c0_i32_0 : i32, i32
  }
  func.func @transform_2(%arg0: i32) -> (i32, i32) {
    %c0_i32 = arith.constant 0 : i32
    %c0_i32_0 = arith.constant 0 : i32
    %c0_i32_1 = arith.constant 0 : i32
    return %c0_i32, %c0_i32_0 : i32, i32
  }
  func.func @transform_3(%arg0: i32) -> (i32, i32, i32) {
    %c0_i32 = arith.constant 0 : i32
    %c0_i32_0 = arith.constant 0 : i32
    %c0_i32_1 = arith.constant 0 : i32
    return %arg0, %c0_i32, %c0_i32_0 : i32, i32, i32
  }
}

</mosaic_0001>

<bundles_post_ra>
// kernel: tpu_custom_call.1
= control target key start
LH: loop header
LB: loop body
LE: loop exit
PB: predicated region body
PF: predicated region fallthrough
CT: control target
= control target key end

     0   :  { %8 = vsyncpa [#allocation3], 0  ;;  %s942_s0 = inlined_call_operand.vmem [shape: f32[2,16,128], index: 0, kind: input, shape index: {}]   ;;  %s943_s1 = inlined_call_operand.hbm [shape: bf16[32,80], index: 1, kind: input, shape index: {}]   ;;  %s944_s2 = inlined_call_operand.vmem [shape: f32[32,3], index: 2, kind: input, shape index: {}]   ;;  %s945_s3 = inlined_call_operand.hbm [shape: f32[2,32,128], index: 3, kind: output, shape index: {}]  }
   0x1   :  { %9 = vsyncpa [#allocation4], 0  ;;  %s16_s14 = sshll.u32 %s943_s1, 4  ;;  %s753_s15 = smov [#allocation2]   ;;  %s17_s14 = int_to_ptr.hbm [resolvable:$true] %s16_s14 }
   0x2   :  { %s18_s16 = sshll.u32 %s753_s15, 4  ;;  %s754_s17 = smov 64   ;;  %s19_s16 = int_to_ptr.vmem [resolvable:$true] %s18_s16 }
   0x3   :  { %s755_s18 = smov 4  }
   0x4   :  { %24 = dma.hbm_to_vmem [thread:$0]  %s17_s14, 256, %s19_s16, [#allocation3], %s754_s17, %s754_s17, %s755_s18  }
   0x5   :  { %749 = dma.done.wait [#allocation3], 256  }
   0x6   :  { %750 = vsyncadd [#allocation3], 4294967040  ;;  %v32_v0 = vld [vmem:[%s942_s0] sm:$0xff]  ;;  %v33_v1 = vld [vmem:[%s942_s0 + $0x8] sm:$0xff]  ;;  %vm52_vm0 = vcmask 31744   ;;  %s756_s26 = smov 122  }
   0x7   :  { %v598_v2 = vpack.i.bf16 %v33_v1, %v32_v0  ;;  %v34_v3 = vld [vmem:[%s942_s0 + $0x10] sm:$0xff]  ;;  %v35_v4 = vld [vmem:[%s942_s0 + $0x18] sm:$0xff]  ;;  %s757_s27 = smov 120   ;;  %s758_s0 = smov 124   ;;  %vm112_vm1 = vcmask 982016   ;;  %vm99_vm2 = vcmask 998400   ;;  %vm550_vm5 = vmneg %vm52_vm0 }
   0x8   :  { %v603_v5 = vpack.i.bf16 %v35_v4, %v34_v3  ;;  %s759_s28 = smov 126   ;;  %v823_v55 = vld [vmem:[%s944_s2 + $0x8] sm:$0xff]  ;;  %v760_v59 = vmov 0   ;;  %v836_v3 = vld [vmem:[%s944_s2 + $0x18] sm:$0xff]  ;;  %v841_v4 = vld [vmem:[%s944_s2 + $0x10] sm:$0xff]  ;;  %vm86_vm3 = vcmask 1014784  }
   0x9   :  { %599 = vrot.lane.b32.xlu0 %v598_v2, %s755_s18  ;;  %689 = vset.pattern.permute.xlu1 %v760_v59  ;;  %v831_v2 = vld [vmem:[%s944_s2] sm:$0xff]  ;;  %vm73_vm4 = vcmask 1031168   ;;  %vm851_vm6 = vmpackc.low %vm550_vm5, %vm550_vm5  ;;  %vm193_vm7 = vcmask 654336   ;;  %s762_s13 = smov 1   ;;  %s764_s14 = smov [#allocation5]  }
   0xa   :  { %688 = vset.pattern.permute.xlu0 %v760_v59  ;;  %690 = vset.pattern.permute.xlu2 %v760_v59  ;;  %s527_s15 = sshll.u32 %s764_s14, 4  ;;  %s765_s19 = smov 128   ;;  %s528_s15 = int_to_ptr.vmem [resolvable:$true] %s527_s15 }
   0xb   :  { %s766_s20 = smov 8  }
  0x11   :  { %604 = vrot.lane.b32.xlu0 %v603_v5, %s755_s18  ;;  %s529_s18 = sshll.u32 %s945_s3, 4  ;;  %s530_s18 = int_to_ptr.hbm [resolvable:$true] %s529_s18 }
  0x7b   :  { %v600_v6 = vpop.permute.xlu0 %599 }
  0x7c   :  { %v601_v7 = vunpack.i.l.bf16 %v600_v6  ;;  %v602_v8 = vunpack.i.h.bf16 %v600_v6 }
  0x7e   :  { %v53_v9 = vsel %vm52_vm0, 0.0, %v601_v7  ;;  %v57_v10 = vsel %vm52_vm0, %v601_v7, 0.0  ;;  %v804_v12 = vpack.c.bf16 %v602_v8, %v601_v7  ;;  %v54_v16 = vsel %vm52_vm0, 0.0, %v602_v8 }
  0x7f   :  { %v628_v11 = vpack.i.bf16 %v57_v10, %v53_v9  ;;  %v58_v17 = vsel %vm52_vm0, %v602_v8, 0.0 }
  0x80   :  { %v613_v24 = vpack.i.bf16 %v58_v17, %v54_v16 }
  0x81   :  { %629 = vrot.lane.b32.xlu0 %v628_v11, %s756_s26  ;;  %609 = vrot.lane.b32.xlu1 %v628_v11, %s757_s27 }
  0x83   :  { %v605_v13 = vpop.permute.xlu0 %604 }
  0x84   :  { %v607_v14 = vunpack.i.h.bf16 %v605_v13  ;;  %v606_v15 = vunpack.i.l.bf16 %v605_v13 }
  0x86   :  { %v56_v18 = vsel %vm52_vm0, 0.0, %v607_v14  ;;  %v60_v19 = vsel %vm52_vm0, %v607_v14, 0.0  ;;  %v55_v20 = vsel %vm52_vm0, 0.0, %v606_v15  ;;  %v59_v21 = vsel %vm52_vm0, %v606_v15, 0.0 }
  0x87   :  { %v618_v22 = vpack.i.bf16 %v59_v21, %v55_v20  ;;  %v643_v23 = vpack.i.bf16 %v60_v19, %v56_v18  ;;  %v812_v25 = vpack.c.bf16 %v607_v14, %v606_v15 }
  0x89   :  { %619 = vrot.lane.b32.xlu2 %v618_v22, %s757_s27  ;;  %644 = vrot.lane.b32.xlu0 %v643_v23, %s756_s26 }
  0x8a   :  { %614 = vrot.lane.b32.xlu1 %v613_v24, %s757_s27 }
  0x91   :  { %624 = vrot.lane.b32.xlu2 %v643_v23, %s757_s27  ;;  %659 = vrot.lane.b32.xlu0 %v618_v22, %s758_s0 }
  0x92   :  { %634 = vrot.lane.b32.xlu1 %v613_v24, %s756_s26 }
  0x99   :  { %639 = vrot.lane.b32.xlu2 %v618_v22, %s756_s26  ;;  %674 = vrot.lane.b32.xlu0 %v613_v24, %s759_s28 }
  0x9a   :  { %649 = vrot.lane.b32.xlu1 %v628_v11, %s758_s0 }
  0xa1   :  { %654 = vrot.lane.b32.xlu2 %v613_v24, %s758_s0  ;;  %244 = vperm.xlu0 %688, %v831_v2  }
  0xa2   :  { %664 = vrot.lane.b32.xlu1 %v643_v23, %s758_s0 }
  0xa9   :  { %669 = vrot.lane.b32.xlu2 %v628_v11, %s759_s28 }
  0xaa   :  { %679 = vrot.lane.b32.xlu1 %v618_v22, %s759_s28 }
  0xb1   :  { %684 = vrot.lane.b32.xlu2 %v643_v23, %s759_s28 }
  0xb2   :  { %249 = vperm.xlu1 %689, %v823_v55  }
  0xb9   :  { %254 = vperm.xlu2 %690, %v841_v4  }
  0xba   :  { %259 = vperm.xlu1 %689, %v836_v3  }
  0xe3   :  { %v620_v26 = vpop.permute.xlu2 %619 }
  0xe4   :  { %v622_v27 = vunpack.i.h.bf16 %v620_v26  ;;  %v621_v28 = vunpack.i.l.bf16 %v620_v26 }
  0xe6   :  { %v165_v32 = vsel %vm112_vm1, %v621_v28, %v622_v27 }
  0xeb   :  { %v625_v29 = vpop.permute.xlu2 %624 }
  0xec   :  { %v627_v30 = vunpack.i.h.bf16 %v625_v29  ;;  %v626_v31 = vunpack.i.l.bf16 %v625_v29 }
  0xee   :  { %v166_v33 = vsel %vm112_vm1, %v626_v31, %v627_v30 }
  0xef   :  { %v178_v34 = vpack.c.bf16 %v166_v33, %v165_v32 }
  0xf1   :  { %222 = vmatpush.bf16.msra.mxu1 %v178_v34  ;;  %571 = vmatpush.bf16.msra.mxu3 %v178_v34  ;;  %v564_v34 = vld [vmem:[#allocation2] sm:$0xff] }
  0xf3   :  { %v630_v35 = vpop.permute.xlu0 %629  ;;  %v610_v36 = vpop.permute.xlu1 %609 }
  0xf4   :  { %v640_v37 = vpop.permute.xlu2 %639  ;;  %v612_v40 = vunpack.i.h.bf16 %v610_v36  ;;  %v611_v41 = vunpack.i.l.bf16 %v610_v36  ;;  %v632_v56 = vunpack.i.h.bf16 %v630_v35  ;;  %v631_v57 = vunpack.i.l.bf16 %v630_v35  ;;  %v565_v35 = vld [vmem:[#allocation2 + $0x8] sm:$0xff] }
  0xf5   :  { %v642_v38 = vunpack.i.h.bf16 %v640_v37  ;;  %v641_v39 = vunpack.i.l.bf16 %v640_v37 }
  0xf6   :  { %v113_v50 = vsel %vm112_vm1, %v611_v41, %v612_v40  ;;  %v100_v63 = vsel %vm99_vm2, %v631_v57, %v632_v56 }
  0xf7   :  { %v153_v48 = vsel %vm99_vm2, %v641_v39, %v642_v38 }
  0xfb   :  { %v645_v42 = vpop.permute.xlu0 %644 }
  0xfc   :  { %v647_v43 = vunpack.i.h.bf16 %v645_v42  ;;  %v646_v44 = vunpack.i.l.bf16 %v645_v42  ;;  %v615_v45 = vpop.permute.xlu1 %614  ;;  %v655_v54 = vpop.permute.xlu2 %654 }
  0xfd   :  { %v617_v46 = vunpack.i.h.bf16 %v615_v45  ;;  %v616_v47 = vunpack.i.l.bf16 %v615_v45  ;;  %v657_v5 = vunpack.i.h.bf16 %v655_v54  ;;  %v656_v6 = vunpack.i.l.bf16 %v655_v54 }
  0xfe   :  { %v154_v49 = vsel %vm99_vm2, %v646_v44, %v647_v43 }
  0xff   :  { %v114_v51 = vsel %vm112_vm1, %v616_v47, %v617_v46  ;;  %v176_v52 = vpack.c.bf16 %v154_v49, %v153_v48  ;;  %v88_v18 = vsel %vm86_vm3, %v656_v6, %v657_v5 }
 0x100   :  { %v177_v53 = vpack.c.bf16 %v114_v51, %v113_v50 }
 0x101   :  { %223 = vmatpush.bf16.msra.mxu1 %v176_v52  ;;  %572 = vmatpush.bf16.msra.mxu3 %v176_v52 }
 0x102   :  { %203 = vmatpush.bf16.msra.mxu0 %v177_v53  ;;  %566 = vmatpush.bf16.msra.mxu2 %v177_v53 }
 0x103   :  { %v660_v58 = vpop.permute.xlu0 %659 }
 0x104   :  { %v635_v60 = vpop.permute.xlu1 %634  ;;  %v670_v8 = vpop.permute.xlu2 %669  ;;  %v662_v21 = vunpack.i.h.bf16 %v660_v58  ;;  %v661_v22 = vunpack.i.l.bf16 %v660_v58 }
 0x105   :  { %v637_v61 = vunpack.i.h.bf16 %v635_v60  ;;  %v636_v62 = vunpack.i.l.bf16 %v635_v60  ;;  %v672_v15 = vunpack.i.h.bf16 %v670_v8  ;;  %v671_v16 = vunpack.i.l.bf16 %v670_v8 }
 0x106   :  { %v141_v30 = vsel %vm86_vm3, %v661_v22, %v662_v21 }
 0x107   :  { %v101_v0 = vsel %vm99_vm2, %v636_v62, %v637_v61  ;;  %v74_v23 = vsel %vm73_vm4, %v671_v16, %v672_v15 }
 0x108   :  { %v175_v1 = vpack.c.bf16 %v101_v0, %v100_v63 }
 0x10a   :  { %204 = vmatpush.bf16.msra.mxu0 %v175_v1  ;;  %567 = vmatpush.bf16.msra.mxu2 %v175_v1 }
 0x10b   :  { %v675_v7 = vpop.permute.xlu0 %674 }
 0x10c   :  { %v650_v9 = vpop.permute.xlu1 %649  ;;  %v677_v10 = vunpack.i.h.bf16 %v675_v7  ;;  %v676_v11 = vunpack.i.l.bf16 %v675_v7  ;;  %v685_v32 = vpop.permute.xlu2 %684 }
 0x10d   :  { %v652_v13 = vunpack.i.h.bf16 %v650_v9  ;;  %v651_v14 = vunpack.i.l.bf16 %v650_v9  ;;  %v687_v36 = vunpack.i.h.bf16 %v685_v32  ;;  %v686_v37 = vunpack.i.l.bf16 %v685_v32 }
 0x10e   :  { %v75_v20 = vsel %vm73_vm4, %v676_v11, %v677_v10 }
 0x10f   :  { %v87_v17 = vsel %vm86_vm3, %v651_v14, %v652_v13  ;;  %v171_v26 = vpack.c.bf16 %v75_v20, %v74_v23  ;;  %v130_v42 = vsel %vm73_vm4, %v686_v37, %v687_v36 }
 0x110   :  { %v173_v19 = vpack.c.bf16 %v88_v18, %v87_v17 }
 0x112   :  { %205 = vmatpush.bf16.msra.mxu0 %v173_v19  ;;  %568 = vmatpush.bf16.msra.mxu2 %v173_v19 }
 0x113   :  { %v245_v45 = vpop.permute.xlu0 %244 }
 0x114   :  { %v665_v24 = vpop.permute.xlu1 %664  ;;  %v255_v48 = vpop.permute.xlu2 %254 }
 0x115   :  { %v667_v27 = vunpack.i.h.bf16 %v665_v24  ;;  %v666_v28 = vunpack.i.l.bf16 %v665_v24 }
 0x116   :  { %206 = vmatpush.bf16.msra.mxu0 %v171_v26  ;;  %569 = vmatpush.bf16.msra.mxu2 %v171_v26 }
 0x117   :  { %v142_v31 = vsel %vm86_vm3, %v666_v28, %v667_v27 }
 0x118   :  { %v174_v33 = vpack.c.bf16 %v142_v31, %v141_v30 }
 0x11a   :  { %554 = vmatpush.bf16.msk.msra.mxu0 %vm851_vm6, %v804_v12  ;;  %570 = vmatpush.bf16.msk.msra.mxu2 %vm851_vm6, %v804_v12 }
 0x11b   :  { %224 = vmatpush.bf16.msra.mxu1 %v174_v33  ;;  %573 = vmatpush.bf16.msra.mxu3 %v174_v33 }
 0x11c   :  { %v680_v38 = vpop.permute.xlu1 %679 }
 0x11d   :  { %v682_v39 = vunpack.i.h.bf16 %v680_v38  ;;  %v681_v40 = vunpack.i.l.bf16 %v680_v38  ;;  %555 = vmatmul.msk.bf16.vlgmr.msra.gmra.mxu0 %vm193_vm7, %v564_v34  ;;  %556 = vmatmul.msk.bf16.vlgmr.msra.gmra.mxu2 %vm193_vm7, %v565_v35 }
 0x11f   :  { %v129_v41 = vsel %vm73_vm4, %v681_v40, %v682_v39 }
 0x120   :  { %v172_v43 = vpack.c.bf16 %v130_v42, %v129_v41 }
 0x122   :  { %225 = vmatpush.bf16.msra.mxu1 %v172_v43  ;;  %574 = vmatpush.bf16.msra.mxu3 %v172_v43 }
 0x124   :  { %v250_v44 = vpop.permute.xlu1 %249 }
 0x126   :  { %561 = vmatpush.bf16.msk.msra.mxu1 %vm851_vm6, %v812_v25  ;;  %575 = vmatpush.bf16.msk.msra.mxu3 %vm851_vm6, %v812_v25 }
 0x129   :  { %562 = vmatmul.msk.bf16.vlgmr.msra.gmra.mxu1 %vm193_vm7, %v564_v34  ;;  %563 = vmatmul.msk.bf16.vlgmr.msra.gmra.mxu3 %vm193_vm7, %v565_v35 }
 0x12c   :  { %v260_v57 = vpop.permute.xlu1 %259 }
 0x19a   :  { %v209_v12 = vpop.f32.mrf.mxu0 }
 0x19b   :  { %v875_v47 = vadd.f32 %v245_v45, %v209_v12 }
 0x19d   :  { %v280_v51 = vmul.f32 %v875_v47, %v875_v47 }
 0x1a0   :  { %v214_v46 = vpop.f32.mrf.mxu2 }
 0x1a1   :  { %v881_v52 = vadd.f32 %v255_v48, %v214_v46 }
 0x1a2   :  { %v211_v49 = vpop.f32.mrf.mxu0 }
 0x1a3   :  { %v877_v50 = vadd.f32 %v250_v44, %v211_v49  ;;  %v282_v59 = vmul.f32 %v881_v52, %v881_v52 }
 0x1a5   :  { %v266_v25 = vadd.f32 %v877_v50, %v875_v47  ;;  %v281_v53 = vmul.f32 %v877_v50, %v877_v50 }
 0x1a6   :  { %v228_v54 = vpop.f32.mrf.mxu1 }
 0x1a7   :  { %v284_v56 = vadd.f32 %v281_v53, %v280_v51  ;;  %v267_v61 = vadd.f32 %v266_v25, %v881_v52  ;;  %v895_v5 = vadd.f32 %v245_v45, %v228_v54  ;;  %v761_v54 = vmov 1  }
 0x1a8   :  { %v216_v58 = vpop.f32.mrf.mxu2  ;;  %691 = vset.pattern.permute.xlu2 %v761_v54  ;;  %693 = vset.pattern.permute.xlu0 %v761_v54 }
 0x1a9   :  { %v889_v60 = vadd.f32 %v260_v57, %v216_v58  ;;  %v285_v0 = vadd.f32 %v284_v56, %v282_v59  ;;  %v410_v9 = vmul.f32 %v895_v5, %v895_v5  ;;  %692 = vset.pattern.permute.xlu1 %v761_v54 }
 0x1ab   :  { %v268_v62 = vadd.f32 %v267_v61, %v889_v60  ;;  %v283_v63 = vmul.f32 %v889_v60, %v889_v60 }
 0x1ac   :  { %v233_v1 = vpop.f32.mrf.mxu3 }
 0x1ad   :  { %269 = vadd.xlane.f32.xlu2 %v268_v62  ;;  %v286_v6 = vadd.f32 %v285_v0, %v283_v63  ;;  %v901_v10 = vadd.f32 %v255_v48, %v233_v1 }
 0x1ae   :  { %v230_v7 = vpop.f32.mrf.mxu1 }
 0x1af   :  { %v897_v8 = vadd.f32 %v250_v44, %v230_v7  ;;  %287 = vadd.xlane.f32.xlu0 %v286_v6  ;;  %v412_v16 = vmul.f32 %v901_v10, %v901_v10 }
 0x1b1   :  { %v396_v11 = vadd.f32 %v897_v8, %v895_v5  ;;  %v411_v13 = vmul.f32 %v897_v8, %v897_v8 }
 0x1b3   :  { %v414_v14 = vadd.f32 %v411_v13, %v410_v9  ;;  %v397_v18 = vadd.f32 %v396_v11, %v901_v10 }
 0x1b4   :  { %v235_v15 = vpop.f32.mrf.mxu3 }
 0x1b5   :  { %v909_v17 = vadd.f32 %v260_v57, %v235_v15  ;;  %v415_v21 = vadd.f32 %v414_v14, %v412_v16 }
 0x1b7   :  { %v398_v19 = vadd.f32 %v397_v18, %v909_v17  ;;  %v413_v20 = vmul.f32 %v909_v17, %v909_v17 }
 0x1b9   :  { %399 = vadd.xlane.f32.xlu1 %v398_v19  ;;  %v416_v22 = vadd.f32 %v415_v21, %v413_v20 }
 0x1bb   :  { %417 = vadd.xlane.f32.xlu2 %v416_v22 }
 0x220   :  { %v270_v23 = vpop.xlane.xlu2 %269 }
 0x221   :  { %v271_v24 = vrot.slane %v270_v23, 4 }
 0x222   :  { %v288_v26 = vpop.xlane.xlu0 %287 }
 0x223   :  { %v272_v27 = vadd.f32 %v271_v24, %v270_v23  ;;  %v289_v28 = vrot.slane %v288_v26, 4 }
 0x225   :  { %v273_v29 = vrot.slane %v272_v27, 2  ;;  %v290_v30 = vadd.f32 %v289_v28, %v288_v26 }
 0x227   :  { %v291_v31 = vrot.slane %v290_v30, 2  ;;  %v274_v32 = vadd.f32 %v273_v29, %v272_v27 }
 0x229   :  { %v275_v33 = vrot.slane %v274_v32, 1  ;;  %v292_v34 = vadd.f32 %v291_v31, %v290_v30 }
 0x22b   :  { %v276_v35 = vadd.f32 %v275_v33, %v274_v32  ;;  %v293_v36 = vrot.slane %v292_v34, 1 }
 0x22c   :  { %v400_v37 = vpop.xlane.xlu1 %399 }
 0x22d   :  { %v401_v38 = vrot.slane %v400_v37, 4  ;;  %576 = vpush %v276_v35  ;;  %v294_v39 = vadd.f32 %v293_v36, %v292_v34 }
 0x22e   :  { %v418_v40 = vpop.xlane.xlu2 %417 }
 0x22f   :  { %v402_v41 = vadd.f32 %v401_v38, %v400_v37  ;;  %v419_v42 = vrot.slane %v418_v40, 4  ;;  %578 = vpush %v294_v39 }
 0x231   :  { %v403_v43 = vrot.slane %v402_v41, 2  ;;  %v420_v12 = vadd.f32 %v419_v42, %v418_v40 }
 0x233   :  { %v421_v44 = vrot.slane %v420_v12, 2  ;;  %v404_v45 = vadd.f32 %v403_v43, %v402_v41 }
 0x235   :  { %v405_v46 = vrot.slane %v404_v45, 1  ;;  %v422_v48 = vadd.f32 %v421_v44, %v420_v12 }
 0x237   :  { %v406_v49 = vadd.f32 %v405_v46, %v404_v45  ;;  %v423_v51 = vrot.slane %v422_v48, 1  ;;  %v763_v46 = vmov 2  }
 0x239   :  { %580 = vpush %v406_v49  ;;  %v424_v25 = vadd.f32 %v423_v51, %v422_v48 }
 0x23b   :  { %582 = vpush %v424_v25 }
 0x25e   :  { %s577_s2 = spop %576 }
 0x25f   :  { %v278_v53 = vstv %s577_s2 }
 0x260   :  { %v279_v56 = vmul.f32 0.00024414063, %v278_v53  ;;  %s579_s10 = spop %578 }
 0x261   :  { %v296_v57 = vstv %s579_s10 }
 0x262   :  { %v297_v58 = vmul.f32 0.00024414063, %v296_v57  ;;  %v298_v59 = vmul.f32 %v279_v56, %v279_v56 }
 0x264   :  { %v299_v61 = vsub.f32 %v297_v58, %v298_v59 }
 0x266   :  { %v300_v62 = vmax.f32 %v299_v61, 0.0 }
 0x268   :  { %v301_v63 = vadd.f32 1e-08, %v300_v62 }
 0x26a   :  { %697 = vrsqrt.f32 %v301_v63  ;;  %s581_s11 = spop %580  ;;  %vm308_vm9 = vweird.f32 %v301_v63 }
 0x26b   :  { %v408_v0 = vstv %s581_s11 }
 0x26c   :  { %v409_v1 = vmul.f32 0.00024414063, %v408_v0  ;;  %s583_s12 = spop %582 }
 0x26d   :  { %v426_v6 = vstv %s583_s12 }
 0x26e   :  { %v427_v7 = vmul.f32 0.00024414063, %v426_v6  ;;  %v428_v9 = vmul.f32 %v409_v1, %v409_v1 }
 0x270   :  { %v698_v11 = vpop.eup %697  ;;  %v429_v13 = vsub.f32 %v427_v7, %v428_v9 }
 0x271   :  { %v303_v14 = vmul.f32 %v698_v11, %v301_v63  ;;  %vm309_vm8 = vweird.f32 %v698_v11 }
 0x272   :  { %v430_v15 = vmax.f32 %v429_v13, 0.0  ;;  %vm310_vm10 = vmor %vm308_vm9, %vm309_vm8 }
 0x273   :  { %v304_v16 = vmul.f32 %v698_v11, %v303_v14 }
 0x274   :  { %v431_v18 = vadd.f32 1e-08, %v430_v15 }
 0x275   :  { %v305_v19 = vmul.f32 0.5, %v304_v16 }
 0x276   :  { %699 = vrsqrt.f32 %v431_v18  ;;  %vm438_vm12 = vweird.f32 %v431_v18 }
 0x277   :  { %v306_v20 = vsub.f32 1.5, %v305_v19 }
 0x279   :  { %v307_v21 = vmul.f32 %v698_v11, %v306_v20 }
 0x27b   :  { %v311_v22 = vsel %vm310_vm10, %v698_v11, %v307_v21 }
 0x27c   :  { %v700_v23 = vpop.eup %699  ;;  %v314_v24 = vmul.f32 %v311_v22, %v841_v4  ;;  %v313_v26 = vmul.f32 %v311_v22, %v823_v55  ;;  %v312_v27 = vmul.f32 %v311_v22, %v831_v2  ;;  %v315_v35 = vmul.f32 %v311_v22, %v836_v3 }
 0x27d   :  { %v433_v28 = vmul.f32 %v700_v23, %v431_v18  ;;  %vm439_vm11 = vweird.f32 %v700_v23 }
 0x27e   :  { %352 = vperm.xlu0 %693, %v314_v24   ;;  %347 = vperm.xlu1 %692, %v313_v26   ;;  %v318_v32 = vmul.f32 %v314_v24, %v279_v56  ;;  %v317_v33 = vmul.f32 %v313_v26, %v279_v56  ;;  %vm440_vm13 = vmor %vm438_vm12, %vm439_vm11  ;;  %v319_v38 = vmul.f32 %v315_v35, %v279_v56 }
 0x27f   :  { %v434_v29 = vmul.f32 %v700_v23, %v433_v28  ;;  %342 = vperm.xlu2 %691, %v312_v27   ;;  %v316_v40 = vmul.f32 %v312_v27, %v279_v56 }
 0x281   :  { %v435_v30 = vmul.f32 0.5, %v434_v29 }
 0x283   :  { %v436_v31 = vsub.f32 1.5, %v435_v30 }
 0x285   :  { %v437_v34 = vmul.f32 %v700_v23, %v436_v31 }
 0x286   :  { %328 = vrot.lane.b32.xlu1 %v318_v32, %s762_s13  ;;  %326 = vrot.lane.b32.xlu0 %v317_v33, %s762_s13 }
 0x287   :  { %357 = vperm.xlu2 %691, %v315_v35   ;;  %v441_v36 = vsel %vm440_vm13, %v700_v23, %v437_v34 }
 0x288   :  { %v444_v37 = vmul.f32 %v441_v36, %v841_v4  ;;  %v442_v41 = vmul.f32 %v441_v36, %v831_v2  ;;  %v443_v42 = vmul.f32 %v441_v36, %v823_v55  ;;  %v445_v44 = vmul.f32 %v441_v36, %v836_v3 }
 0x28a   :  { %v448_v39 = vmul.f32 %v444_v37, %v409_v1  ;;  %v446_v43 = vmul.f32 %v442_v41, %v409_v1  ;;  %v447_v12 = vmul.f32 %v443_v42, %v409_v1  ;;  %v449_v45 = vmul.f32 %v445_v44, %v409_v1 }
 0x28e   :  { %330 = vrot.lane.b32.xlu0 %v319_v38, %s762_s13  ;;  %458 = vrot.lane.b32.xlu1 %v448_v39, %s762_s13 }
 0x28f   :  { %324 = vrot.lane.b32.xlu2 %v316_v40, %s762_s13 }
 0x296   :  { %472 = vperm.xlu1 %692, %v442_v41   ;;  %454 = vrot.lane.b32.xlu0 %v446_v43, %s762_s13 }
 0x297   :  { %456 = vrot.lane.b32.xlu2 %v447_v12, %s762_s13 }
 0x29e   :  { %487 = vperm.xlu1 %692, %v445_v44   ;;  %460 = vrot.lane.b32.xlu0 %v449_v45, %s762_s13 }
 0x29f   :  { %482 = vperm.xlu2 %691, %v444_v37  }
 0x2a6   :  { %477 = vperm.xlu0 %693, %v443_v42   ;;  %694 = vset.pattern.permute.xlu1 %v763_v46 }
 0x2a7   :  { %695 = vset.pattern.permute.xlu2 %v763_v46 }
 0x2ae   :  { %696 = vset.pattern.permute.xlu0 %v763_v46 }
 0x2d9   :  { %v343_v48 = vpop.permute.xlu2 %342 }
 0x2e1   :  { %v358_v49 = vpop.permute.xlu2 %357 }
 0x2e2   :  { %v363_v20 = vmul.f32 %v358_v49, %v889_v60 }
 0x2e9   :  { %v325_v51 = vpop.permute.xlu2 %324 }
 0x2ea   :  { %v336_v25 = vsub.f32 %v831_v2, %v325_v51 }
 0x2ec   :  { %366 = vperm.xlu1 %694, %v336_v25  }
 0x2f0   :  { %v353_v53 = vpop.permute.xlu0 %352  ;;  %v348_v54 = vpop.permute.xlu1 %347 }
 0x2f1   :  { %v457_v1 = vpop.permute.xlu2 %456  ;;  %v361_v16 = vmul.f32 %v348_v54, %v877_v50  ;;  %v362_v50 = vmul.f32 %v353_v53, %v881_v52 }
 0x2f2   :  { %v467_v7 = vsub.f32 %v823_v55, %v457_v1 }
 0x2f8   :  { %v329_v56 = vpop.permute.xlu1 %328  ;;  %v327_v57 = vpop.permute.xlu0 %326 }
 0x2f9   :  { %v338_v58 = vsub.f32 %v841_v4, %v329_v56  ;;  %v337_v59 = vsub.f32 %v823_v55, %v327_v57  ;;  %v483_v15 = vpop.permute.xlu2 %482  ;;  %v360_v55 = vmul.f32 %v343_v48, %v875_v47 }
 0x2fa   :  { %v492_v31 = vmul.f32 %v483_v15, %v901_v10 }
 0x2fb   :  { %371 = vperm.xlu2 %695, %v337_v59   ;;  %376 = vperm.xlu1 %694, %v338_v58  }
 0x300   :  { %v331_v61 = vpop.permute.xlu0 %330  ;;  %v459_v62 = vpop.permute.xlu1 %458 }
 0x301   :  { %v339_v63 = vsub.f32 %v836_v3, %v331_v61  ;;  %v468_v0 = vsub.f32 %v841_v4, %v459_v62 }
 0x303   :  { %381 = vperm.xlu2 %695, %v339_v63   ;;  %506 = vperm.xlu1 %694, %v468_v0  }
 0x308   :  { %v455_v6 = vpop.permute.xlu0 %454  ;;  %v473_v14 = vpop.permute.xlu1 %472 }
 0x309   :  { %v466_v9 = vsub.f32 %v831_v2, %v455_v6  ;;  %v490_v52 = vmul.f32 %v473_v14, %v895_v5 }
 0x30b   :  { %496 = vperm.xlu0 %696, %v466_v9   ;;  %501 = vperm.xlu2 %695, %v467_v7  }
 0x310   :  { %v461_v11 = vpop.permute.xlu0 %460  ;;  %v488_v4 = vpop.permute.xlu1 %487 }
 0x311   :  { %v469_v13 = vsub.f32 %v836_v3, %v461_v11  ;;  %v493_v28 = vmul.f32 %v488_v4, %v909_v17 }
 0x313   :  { %511 = vperm.xlu2 %695, %v469_v13  }
 0x318   :  { %v478_v24 = vpop.permute.xlu0 %477 }
 0x319   :  { %v491_v3 = vmul.f32 %v478_v24, %v897_v8 }
 0x355   :  { %v372_v18 = vpop.permute.xlu2 %371 }
 0x356   :  { %v385_v19 = vadd.f32 %v372_v18, %v361_v16 }
 0x358   :  { %389 = vst [vmem:[#allocation5 + $0x8] sm:$0xff] %v385_v19 }
 0x35d   :  { %v382_v21 = vpop.permute.xlu2 %381 }
 0x35e   :  { %v367_v2 = vpop.permute.xlu1 %366  ;;  %v387_v22 = vadd.f32 %v382_v21, %v363_v20 }
 0x35f   :  { %v384_v23 = vadd.f32 %v367_v2, %v360_v55 }
 0x360   :  { %391 = vst [vmem:[#allocation5 + $0x18] sm:$0xff] %v387_v22 }
 0x361   :  { %388 = vst [vmem:[#allocation5] sm:$0xff] %v384_v23 }
 0x365   :  { %v502_v26 = vpop.permute.xlu2 %501 }
 0x366   :  { %v515_v27 = vadd.f32 %v502_v26, %v491_v3 }
 0x368   :  { %520 = vst [vmem:[#allocation5 + $0x28] sm:$0xff] %v515_v27 }
 0x36d   :  { %v377_v29 = vpop.permute.xlu1 %376  ;;  %v512_v60 = vpop.permute.xlu2 %511 }
 0x36e   :  { %v386_v30 = vadd.f32 %v377_v29, %v362_v50  ;;  %v517_v47 = vadd.f32 %v512_v60, %v493_v28 }
 0x370   :  { %390 = vst [vmem:[#allocation5 + $0x10] sm:$0xff] %v386_v30 }
 0x371   :  { %522 = vst [vmem:[#allocation5 + $0x38] sm:$0xff] %v517_v47 }
 0x375   :  { %v507_v32 = vpop.permute.xlu1 %506 }
 0x376   :  { %v516_v33 = vadd.f32 %v507_v32, %v492_v31 }
 0x378   :  { %521 = vst [vmem:[#allocation5 + $0x30] sm:$0xff] %v516_v33 }
 0x37d   :  { %v497_v8 = vpop.permute.xlu0 %496 }
 0x37e   :  { %v514_v17 = vadd.f32 %v497_v8, %v490_v52 }
 0x380   :  { %519 = vst [vmem:[#allocation5 + $0x20] sm:$0xff] %v514_v17 }
 0x381   :  { %535 = dma.vmem_to_hbm [thread:$0]  %s528_s15, 1024, %s530_s18, [#allocation4], %s765_s19, %s765_s19, %s766_s20  }
 0x382   :  { %751 = dma.done.wait [#allocation4], 1024  }
 0x383   :  { %752 = vsyncadd [#allocation4], 4294966272 }
 0x384   :  { %540 = vsyncpa [#allocation3], 1 }
 0x385   :  { %541 = vsyncpa [#allocation4], 1 }

</bundles_post_ra>
